<compile_context>
chip_gen: v6e
topology: v6e:2x2x1
jax: 0.10.0
libtpu: 0.0.40
codegen_flags: <defaults>
</compile_context>

<pallas_src>
import functools

import jax
import jax.numpy as jnp
from jax import lax
from jax.experimental import pallas as pl
from jax.experimental.pallas import tpu as pltpu

HIDDEN = 64          # ResNetFCN hardwires the hidden width to 64
LANE = 128           # TPU lane width
_UNROLL_MAX = 4      # statically unroll the block loop up to this many blocks


def _round_up(n, m):
    return ((n + m - 1) // m) * m


def resnet_fcn_kernel(num_blocks,
                      x_ref, w1_ref, b1_ref, wblk_ref, bblk_ref,
                      w2_ref, b2_ref, out_ref):
    """One batch tile of the full forward pass.

    x_ref   : (TB, in_features)      bf16
    w1_ref  : (in_features, 64)      bf16
    b1_ref  : (1, 64)                f32
    wblk_ref: (num_blocks, 64, 64)   bf16   folded  wb1[i] @ wb2[i]
    bblk_ref: (num_blocks, 1, 64)    f32    folded  bb1[i] @ wb2[i] + bb2[i]
    w2_ref  : (64, C_pad)            bf16   lane-padded fc2 weight
    b2_ref  : (1, C_pad)             f32    lane-padded fc2 bias
    out_ref : (TB, C_pad)            f32
    """
    # fc1 (no activation after fc1 in the reference module).
    h = jnp.dot(x_ref[...], w1_ref[...],
                preferred_element_type=jnp.float32) + b1_ref[...]

    def block(i, h):
        # Folded residual block: a single 64x64 matmul per block.
        t = jnp.dot(h.astype(jnp.bfloat16), wblk_ref[i],
                    preferred_element_type=jnp.float32) + bblk_ref[i]
        return jnp.maximum(t + h, 0.0)        # out += residual; relu(out)

    if num_blocks <= _UNROLL_MAX:
        for i in range(num_blocks):           # static unroll for small counts
            h = block(i, h)
    else:
        h = lax.fori_loop(0, num_blocks, block, h)   # bounded live ranges

    # fc2: lane-dense (TB, C_pad) store; caller slices back to num_classes.
    out_ref[...] = (jnp.dot(h.astype(jnp.bfloat16), w2_ref[...],
                            preferred_element_type=jnp.float32)
                    + b2_ref[...]).astype(out_ref.dtype)


def init_params(key, in_features, num_blocks, num_classes):
    """Deterministic init mimicking nn.Linear's uniform(-1/sqrt(fan_in), ...)."""
    def linear(k, fan_in, fan_out):
        kw, kb = jax.random.split(k)
        bound = 1.0 / jnp.sqrt(jnp.float32(fan_in))
        w = jax.random.uniform(kw, (fan_in, fan_out), jnp.float32, -bound, bound)
        b = jax.random.uniform(kb, (1, fan_out), jnp.float32, -bound, bound)
        return w, b

    keys = jax.random.split(key, 2 + 2 * num_blocks)
    w1, b1 = linear(keys[0], in_features, HIDDEN)
    wb1, bb1, wb2, bb2 = [], [], [], []
    for i in range(num_blocks):
        wa, ba = linear(keys[2 + 2 * i], HIDDEN, HIDDEN)
        wb, bb = linear(keys[3 + 2 * i], HIDDEN, HIDDEN)
        wb1.append(wa); bb1.append(ba); wb2.append(wb); bb2.append(bb)
    w2, b2 = linear(keys[1], HIDDEN, num_classes)
    return dict(
        w1=w1, b1=b1,
        wb1=jnp.stack(wb1), bb1=jnp.stack(bb1),
        wb2=jnp.stack(wb2), bb2=jnp.stack(bb2),
        w2=w2, b2=b2,
    )


def resnet_fcn_forward(x, params, num_blocks, *, block_batch=256):
    batch, in_features = x.shape
    num_classes = params["w2"].shape[1]

    # --- wrapper-side prep (layout + exact algebraic folding) ----------------
    hp = jax.lax.Precision.HIGHEST
    # Fold the two chained linears per block (no ReLU between them -> exact).
    w_blk = jnp.einsum("bij,bjk->bik", params["wb1"], params["wb2"], precision=hp)
    b_blk = jnp.einsum("bij,bjk->bik", params["bb1"], params["wb2"],
                       precision=hp) + params["bb2"]

    # Lane-pad fc2 output dim to a multiple of 128 for lane-dense stores.
    c_pad = _round_up(max(num_classes, LANE), LANE)
    w2p = jnp.zeros((HIDDEN, c_pad), jnp.float32).at[:, :num_classes].set(params["w2"])
    b2p = jnp.zeros((1, c_pad), jnp.float32).at[:, :num_classes].set(params["b2"])

    # Batch tiling: pad batch to a multiple of the tile (tile multiple of 8).
    tb = min(block_batch, _round_up(batch, 8))
    b_pad = _round_up(batch, tb)
    xp = x if b_pad == batch else jnp.pad(x, ((0, b_pad - batch), (0, 0)))

    # bf16 matmul operands (f32 accumulation inside); biases stay f32.
    xp = xp.astype(jnp.bfloat16)
    w1 = params["w1"].astype(jnp.bfloat16)
    w_blk = w_blk.astype(jnp.bfloat16)
    w2p = w2p.astype(jnp.bfloat16)
    b1 = params["b1"].astype(jnp.float32)
    b_blk = b_blk.astype(jnp.float32)

    grid = (b_pad // tb,)
    kernel = functools.partial(resnet_fcn_kernel, num_blocks)

    flops = 2 * b_pad * (in_features * HIDDEN
                         + num_blocks * HIDDEN * HIDDEN
                         + HIDDEN * c_pad)
    bytes_accessed = (xp.size * 2 + w1.size * 2 + b1.size * 4
                      + w_blk.size * 2 + b_blk.size * 4
                      + w2p.size * 2 + b2p.size * 4
                      + b_pad * c_pad * 4)

    out = pl.pallas_call(
        kernel,
        out_shape=jax.ShapeDtypeStruct((b_pad, c_pad), jnp.float32),
        grid=grid,
        in_specs=[
            pl.BlockSpec((tb, in_features), lambda i: (i, 0)),               # x tile
            pl.BlockSpec((in_features, HIDDEN), lambda i: (0, 0)),           # w1 (resident)
            pl.BlockSpec((1, HIDDEN), lambda i: (0, 0)),                     # b1
            pl.BlockSpec((num_blocks, HIDDEN, HIDDEN), lambda i: (0, 0, 0)), # folded W
            pl.BlockSpec((num_blocks, 1, HIDDEN), lambda i: (0, 0, 0)),      # folded b
            pl.BlockSpec((HIDDEN, c_pad), lambda i: (0, 0)),                 # w2 (padded)
            pl.BlockSpec((1, c_pad), lambda i: (0, 0)),                      # b2 (padded)
        ],
        out_specs=pl.BlockSpec((tb, c_pad), lambda i: (i, 0)),
        compiler_params=pltpu.CompilerParams(
            dimension_semantics=("parallel",)),      # shard batch tiles across TCs
        cost_estimate=pl.CostEstimate(flops=flops, transcendentals=0,
                                      bytes_accessed=bytes_accessed),
    )(xp, w1, b1, w_blk, b_blk, w2p, b2p)

    return out[:batch, :num_classes]


def resnet_fcn_reference(x, params, num_blocks):
    """Pure-JAX f32 reference (mirrors the PyTorch forward exactly, unfused)."""
    hp = jax.lax.Precision.HIGHEST
    dot = lambda a, b: jnp.dot(a, b, precision=hp)
    h = dot(x, params["w1"]) + params["b1"]
    for i in range(num_blocks):
        residual = h
        t = dot(h, params["wb1"][i]) + params["bb1"][i]
        t = dot(t, params["wb2"][i]) + params["bb2"][i]
        h = jnp.maximum(t + residual, 0.0)
    return dot(h, params["w2"]) + params["b2"]


if __name__ == "__main__":
    key = jax.random.PRNGKey(0)

    # --- config 1: tiny (static unroll path, single batch tile) --------------
    batch, in_features, num_blocks, num_classes = 8, 32, 2, 10
    kx, kp, key = jax.random.split(key, 3)
    x = jax.random.normal(kx, (batch, in_features), jnp.float32)
    params = init_params(kp, in_features, num_blocks, num_classes)

    out = jax.block_until_ready(resnet_fcn_forward(x, params, num_blocks))
    ref = resnet_fcn_reference(x, params, num_blocks)
    assert out.shape == (batch, num_classes)
    assert jnp.allclose(out, ref, atol=3e-2, rtol=3e-2), \
        f"mismatch (max abs err {jnp.max(jnp.abs(out - ref))})"

    # --- config 2: exercises fori_loop block path + multi-tile batch grid ----
    batch2, num_blocks2 = 24, 8
    kx2, kp2 = jax.random.split(key)
    x2 = jax.random.normal(kx2, (batch2, in_features), jnp.float32)
    params2 = init_params(kp2, in_features, num_blocks2, num_classes)

    out2 = jax.block_until_ready(
        resnet_fcn_forward(x2, params2, num_blocks2, block_batch=8))
    ref2 = resnet_fcn_reference(x2, params2, num_blocks2)
    assert out2.shape == (batch2, num_classes)
    assert jnp.allclose(out2, ref2, atol=7e-2, rtol=7e-2), \
        f"mismatch (max abs err {jnp.max(jnp.abs(out2 - ref2))})"

    print("KERNEL_OK")
</pallas_src>

<mosaic_0001>
module attributes {stable_mosaic.version = 11 : i64} {
  func.func @resnet_fcn_kernel(%arg0: i32, %arg1: memref<8x32xbf16, #tpu.memory_space<vmem>>, %arg2: memref<32x64xbf16, #tpu.memory_space<vmem>>, %arg3: memref<1x64xf32, #tpu.memory_space<vmem>>, %arg4: memref<2x64x64xbf16, #tpu.memory_space<vmem>>, %arg5: memref<2x1x64xf32, #tpu.memory_space<vmem>>, %arg6: memref<64x128xbf16, #tpu.memory_space<vmem>>, %arg7: memref<1x128xf32, #tpu.memory_space<vmem>>, %arg8: memref<8x128xf32, #tpu.memory_space<vmem>>) attributes {dimension_semantics = [#tpu.dimension_semantics<parallel>], iteration_bounds = array<i64: 1>, scalar_prefetch = 0 : i64, scratch_operands = 0 : i64, tpu.core_type = #tpu.core_type<tc>, window_params = [{transform_indices = @transform_0, window_bounds = array<i64: 8, 32>}, {pipeline_mode = #tpu.pipeline_mode<synchronous>, transform_indices = @transform_1, window_bounds = array<i64: 32, 64>}, {pipeline_mode = #tpu.pipeline_mode<synchronous>, transform_indices = @transform_2, window_bounds = array<i64: 1, 64>}, {pipeline_mode = #tpu.pipeline_mode<synchronous>, transform_indices = @transform_3, window_bounds = array<i64: 2, 64, 64>}, {pipeline_mode = #tpu.pipeline_mode<synchronous>, transform_indices = @transform_4, window_bounds = array<i64: 2, 1, 64>}, {pipeline_mode = #tpu.pipeline_mode<synchronous>, transform_indices = @transform_5, window_bounds = array<i64: 64, 128>}, {pipeline_mode = #tpu.pipeline_mode<synchronous>, transform_indices = @transform_6, window_bounds = array<i64: 1, 128>}, {transform_indices = @transform_7, window_bounds = array<i64: 8, 128>}]} {
    %c0 = arith.constant 0 : index
    %c0_0 = arith.constant 0 : index
    %0 = vector.load %arg1[%c0, %c0_0] : memref<8x32xbf16, #tpu.memory_space<vmem>>, vector<8x32xbf16>
    %c0_1 = arith.constant 0 : index
    %c0_2 = arith.constant 0 : index
    %1 = vector.load %arg2[%c0_1, %c0_2] : memref<32x64xbf16, #tpu.memory_space<vmem>>, vector<32x64xbf16>
    %cst = arith.constant dense<0.000000e+00> : vector<8x64xf32>
    %2 = tpu.matmul %0, %1, %cst {dimension_numbers = #tpu.dot_dimension_numbers<[1], [0], [0], [1], [0, 0, 1, 1], [], []>} : vector<8x32xbf16>, vector<32x64xbf16>, vector<8x64xf32> -> vector<8x64xf32>
    %c0_3 = arith.constant 0 : index
    %c0_4 = arith.constant 0 : index
    %3 = vector.load %arg3[%c0_3, %c0_4] : memref<1x64xf32, #tpu.memory_space<vmem>>, vector<1x64xf32>
    %4 = vector.broadcast %3 : vector<1x64xf32> to vector<8x64xf32>
    %5 = arith.addf %2, %4 : vector<8x64xf32>
    %6 = arith.truncf %5 : vector<8x64xf32> to vector<8x64xbf16>
    %c0_5 = arith.constant 0 : index
    %c0_6 = arith.constant 0 : index
    %c0_7 = arith.constant 0 : index
    %7 = vector.load %arg4[%c0_5, %c0_6, %c0_7] : memref<2x64x64xbf16, #tpu.memory_space<vmem>>, vector<1x64x64xbf16>
    %8 = vector.shape_cast %7 : vector<1x64x64xbf16> to vector<64x64xbf16>
    %cst_8 = arith.constant dense<0.000000e+00> : vector<8x64xf32>
    %9 = tpu.matmul %6, %8, %cst_8 {dimension_numbers = #tpu.dot_dimension_numbers<[1], [0], [0], [1], [0, 0, 1, 1], [], []>} : vector<8x64xbf16>, vector<64x64xbf16>, vector<8x64xf32> -> vector<8x64xf32>
    %c0_9 = arith.constant 0 : index
    %c0_10 = arith.constant 0 : index
    %c0_11 = arith.constant 0 : index
    %10 = vector.load %arg5[%c0_9, %c0_10, %c0_11] : memref<2x1x64xf32, #tpu.memory_space<vmem>>, vector<1x1x64xf32>
    %11 = vector.shape_cast %10 : vector<1x1x64xf32> to vector<1x64xf32>
    %12 = vector.broadcast %11 : vector<1x64xf32> to vector<8x64xf32>
    %13 = arith.addf %9, %12 : vector<8x64xf32>
    %14 = arith.addf %13, %5 : vector<8x64xf32>
    %cst_12 = arith.constant 0.000000e+00 : f32
    %15 = vector.broadcast %cst_12 : f32 to vector<8x64xf32>
    %16 = arith.maximumf %14, %15 : vector<8x64xf32>
    %17 = arith.truncf %16 : vector<8x64xf32> to vector<8x64xbf16>
    %c1 = arith.constant 1 : index
    %c0_13 = arith.constant 0 : index
    %c0_14 = arith.constant 0 : index
    %18 = vector.load %arg4[%c1, %c0_13, %c0_14] : memref<2x64x64xbf16, #tpu.memory_space<vmem>>, vector<1x64x64xbf16>
    %19 = vector.shape_cast %18 : vector<1x64x64xbf16> to vector<64x64xbf16>
    %cst_15 = arith.constant dense<0.000000e+00> : vector<8x64xf32>
    %20 = tpu.matmul %17, %19, %cst_15 {dimension_numbers = #tpu.dot_dimension_numbers<[1], [0], [0], [1], [0, 0, 1, 1], [], []>} : vector<8x64xbf16>, vector<64x64xbf16>, vector<8x64xf32> -> vector<8x64xf32>
    %c1_16 = arith.constant 1 : index
    %c0_17 = arith.constant 0 : index
    %c0_18 = arith.constant 0 : index
    %21 = vector.load %arg5[%c1_16, %c0_17, %c0_18] : memref<2x1x64xf32, #tpu.memory_space<vmem>>, vector<1x1x64xf32>
    %22 = vector.shape_cast %21 : vector<1x1x64xf32> to vector<1x64xf32>
    %23 = vector.broadcast %22 : vector<1x64xf32> to vector<8x64xf32>
    %24 = arith.addf %20, %23 : vector<8x64xf32>
    %25 = arith.addf %24, %16 : vector<8x64xf32>
    %cst_19 = arith.constant 0.000000e+00 : f32
    %26 = vector.broadcast %cst_19 : f32 to vector<8x64xf32>
    %27 = arith.maximumf %25, %26 : vector<8x64xf32>
    %28 = arith.truncf %27 : vector<8x64xf32> to vector<8x64xbf16>
    %c0_20 = arith.constant 0 : index
    %c0_21 = arith.constant 0 : index
    %29 = vector.load %arg6[%c0_20, %c0_21] : memref<64x128xbf16, #tpu.memory_space<vmem>>, vector<64x128xbf16>
    %cst_22 = arith.constant dense<0.000000e+00> : vector<8x128xf32>
    %30 = tpu.matmul %28, %29, %cst_22 {dimension_numbers = #tpu.dot_dimension_numbers<[1], [0], [0], [1], [0, 0, 1, 1], [], []>} : vector<8x64xbf16>, vector<64x128xbf16>, vector<8x128xf32> -> vector<8x128xf32>
    %c0_23 = arith.constant 0 : index
    %c0_24 = arith.constant 0 : index
    %31 = vector.load %arg7[%c0_23, %c0_24] : memref<1x128xf32, #tpu.memory_space<vmem>>, vector<1x128xf32>
    %32 = vector.broadcast %31 : vector<1x128xf32> to vector<8x128xf32>
    %33 = arith.addf %30, %32 : vector<8x128xf32>
    %c0_25 = arith.constant 0 : index
    %c0_26 = arith.constant 0 : index
    %34 = vector.load %arg8[%c0_25, %c0_26] : memref<8x128xf32, #tpu.memory_space<vmem>>, vector<8x128xf32>
    tpu.vector_store %arg8[%c0_25, %c0_26], %33 {strides = array<i32>} : memref<8x128xf32, #tpu.memory_space<vmem>>, vector<8x128xf32>,
    return
  }
  func.func @transform_0(%arg0: i32) -> (i32, i32) {
    %c0_i32 = arith.constant 0 : i32
    %c0_i32_0 = arith.constant 0 : i32
    return %arg0, %c0_i32 : i32, i32
  }
  func.func @transform_1(%arg0: i32) -> (i32, i32) {
    %c0_i32 = arith.constant 0 : i32
    %c0_i32_0 = arith.constant 0 : i32
    %c0_i32_1 = arith.constant 0 : i32
    return %c0_i32, %c0_i32_0 : i32, i32
  }
  func.func @transform_2(%arg0: i32) -> (i32, i32) {
    %c0_i32 = arith.constant 0 : i32
    %c0_i32_0 = arith.constant 0 : i32
    %c0_i32_1 = arith.constant 0 : i32
    return %c0_i32, %c0_i32_0 : i32, i32
  }
  func.func @transform_3(%arg0: i32) -> (i32, i32, i32) {
    %c0_i32 = arith.constant 0 : i32
    %c0_i32_0 = arith.constant 0 : i32
    %c0_i32_1 = arith.constant 0 : i32
    %c0_i32_2 = arith.constant 0 : i32
    return %c0_i32, %c0_i32_0, %c0_i32_1 : i32, i32, i32
  }
  func.func @transform_4(%arg0: i32) -> (i32, i32, i32) {
    %c0_i32 = arith.constant 0 : i32
    %c0_i32_0 = arith.constant 0 : i32
    %c0_i32_1 = arith.constant 0 : i32
    %c0_i32_2 = arith.constant 0 : i32
    return %c0_i32, %c0_i32_0, %c0_i32_1 : i32, i32, i32
  }
  func.func @transform_5(%arg0: i32) -> (i32, i32) {
    %c0_i32 = arith.constant 0 : i32
    %c0_i32_0 = arith.constant 0 : i32
    %c0_i32_1 = arith.constant 0 : i32
    return %c0_i32, %c0_i32_0 : i32, i32
  }
  func.func @transform_6(%arg0: i32) -> (i32, i32) {
    %c0_i32 = arith.constant 0 : i32
    %c0_i32_0 = arith.constant 0 : i32
    %c0_i32_1 = arith.constant 0 : i32
    return %c0_i32, %c0_i32_0 : i32, i32
  }
  func.func @transform_7(%arg0: i32) -> (i32, i32) {
    %c0_i32 = arith.constant 0 : i32
    %c0_i32_0 = arith.constant 0 : i32
    return %arg0, %c0_i32 : i32, i32
  }
}

</mosaic_0001>

<bundles_post_ra>
// kernel: tpu_custom_call.1
= control target key start
LH: loop header
LB: loop body
LE: loop exit
PB: predicated region body
PF: predicated region fallthrough
CT: control target
= control target key end

     0   :  { %12 = vsyncpa [#allocation3], 0  ;;  %s749_s0 = inlined_call_operand.hbm [shape: bf16[8,32], index: 0, kind: input, shape index: {}]   ;;  %s750_s1 = inlined_call_operand.hbm [shape: bf16[32,64], index: 1, kind: input, shape index: {}]   ;;  %s751_s2 = inlined_call_operand.vmem [shape: f32[1,64], index: 2, kind: input, shape index: {}]   ;;  %s752_s3 = inlined_call_operand.hbm [shape: bf16[2,64,64], index: 3, kind: input, shape index: {}]   ;;  %s753_s4 = inlined_call_operand.vmem [shape: f32[2,1,64], index: 4, kind: input, shape index: {}]   ;;  %s754_s5 = inlined_call_operand.hbm [shape: bf16[64,128], index: 5, kind: input, shape index: {}]   ;;  %s755_s6 = inlined_call_operand.vmem [shape: f32[1,128], index: 6, kind: input, shape index: {}]   ;;  %s756_s7 = inlined_call_operand.hbm [shape: f32[8,128], index: 7, kind: output, shape index: {}]  }
   0x1   :  { %13 = vsyncpa [#allocation6], 0 }
   0x2   :  { %14 = vsyncpa [#allocation9], 0 }
   0x3   :  { %15 = vsyncpa [#allocation4], 0  ;;  %s639_s24 = smov [#allocation5]  }
   0x4   :  { %s31_s25 = sshll.u32 %s639_s24, 4  ;;  %s32_s25 = int_to_ptr.vmem [resolvable:$true] %s31_s25 }
   0x5   :  { %s539_s26 = scalar_lea.vmem %s32_s25, 256  ;;  %p544_p1 = scmp.lt.s32.totalorder %s32_s25, %s32_s25 }
   0x6   :  { %p540_p0 = scmp.ne.s32.totalorder %s32_s25, %s539_s26  ;;  %p545_p2 = scmp.lt.s32.totalorder %s539_s26, %s539_s26 }
   0x8   :  { %p546_p3 = por %p545_p2, %p544_p1 }
   0xa   :  { %p547_p4 = pnand %p546_p3, %p540_p0 }
   0xc   :  { %550 = shalt.err (!%p547_p4)
}
   0xd   :  { %s640_s27 = smov 64   ;;  %s641_s28 = smov 4  }
   0xe   :  { %37 = dma.hbm_to_vmem [thread:$0]  %s750_s1, 256, %s32_s25, [#allocation6], %s640_s27, %s640_s27, %s641_s28  }
   0xf   :  { %s642_s8 = smov [#allocation2]   ;;  %s643_s10 = smov [#allocation7]  }
  0x10   :  { %s22_s9 = sshll.u32 %s642_s8, 4  ;;  %s45_s11 = sshll.u32 %s643_s10, 4  ;;  %s23_s9 = int_to_ptr.vmem [resolvable:$true] %s22_s9  ;;  %s46_s11 = int_to_ptr.vmem [resolvable:$true] %s45_s11 }
  0x11   :  { %s559_s12 = scalar_lea.vmem %s23_s9, 64  ;;  %p564_p6 = scmp.lt.s32.totalorder %s23_s9, %s23_s9 }
  0x12   :  { %p560_p5 = scmp.ne.s32.totalorder %s23_s9, %s559_s12  ;;  %p565_p7 = scmp.lt.s32.totalorder %s559_s12, %s559_s12 }
  0x14   :  { %p566_p8 = por %p565_p7, %p564_p6 }
  0x16   :  { %p567_p9 = pnand %p566_p8, %p560_p5 }
  0x18   :  { %570 = shalt.err (!%p567_p9)
}
  0x19   :  { %25 = dma.hbm_to_vmem [thread:$0]  %s749_s0, 64, %s23_s9, [#allocation3]  }
  0x1a   :  { %s579_s15 = scalar_lea.vmem %s46_s11, 1024  ;;  %p584_p11 = scmp.lt.s32.totalorder %s46_s11, %s46_s11 }
  0x1b   :  { %p580_p10 = scmp.ne.s32.totalorder %s46_s11, %s579_s15  ;;  %p585_p12 = scmp.lt.s32.totalorder %s579_s15, %s579_s15 }
  0x1d   :  { %p586_p13 = por %p585_p12, %p584_p11 }
  0x1f   :  { %p587_p0 = pnand %p586_p13, %p580_p10 }
  0x21   :  { %590 = shalt.err (!%p587_p0)
}
  0x22   :  { %51 = dma.hbm_to_vmem [thread:$0]  %s752_s3, 1024, %s46_s11, [#allocation6], %s640_s27, %s640_s27, %s641_s28  }
  0x23   :  { %s644_s17 = smov [#allocation8]  }
  0x24   :  { %s59_s18 = sshll.u32 %s644_s17, 4  ;;  %s60_s18 = int_to_ptr.vmem [resolvable:$true] %s59_s18 }
  0x25   :  { %s599_s19 = scalar_lea.vmem %s60_s18, 512  ;;  %p604_p2 = scmp.lt.s32.totalorder %s60_s18, %s60_s18 }
  0x26   :  { %p600_p1 = scmp.ne.s32.totalorder %s60_s18, %s599_s19  ;;  %p605_p3 = scmp.lt.s32.totalorder %s599_s19, %s599_s19 }
  0x28   :  { %p606_p4 = por %p605_p3, %p604_p2 }
  0x2a   :  { %p607_p5 = pnand %p606_p4, %p600_p1 }
  0x2c   :  { %610 = shalt.err (!%p607_p5)
}
  0x2d   :  { %65 = dma.hbm_to_vmem [thread:$0]  %s754_s5, 512, %s60_s18, [#allocation9], %s640_s27, %s640_s27, %s641_s28  }
  0x2e   :  { %631 = dma.done.wait [#allocation3], 64  }
  0x2f   :  { %632 = vsyncadd [#allocation3], 4294967232 }
  0x30   :  { %633 = dma.done.wait [#allocation6], 1280  }
  0x31   :  { %634 = vsyncadd [#allocation6], 4294966016 }
  0x32   :  { %635 = dma.done.wait [#allocation9], 512  }
  0x33   :  { %636 = vsyncadd [#allocation9], 4294966784  ;;  %v645_v0 = vmov 0.0   ;;  %vm646_vm0 = vmmov 0   ;;  %v517_v1 = vld [vmem:[#allocation5 + $0x8] sm:$0xff]   ;;  %v518_v2 = vld [vmem:[#allocation5] sm:$0xff]  }
  0x34   :  { %464 = vmatprep.subr.bf16.mxu0 %v645_v0  ;;  %468 = vmatprep.mubr.msk.bf16.mxu0 %vm646_vm0, %v645_v0  ;;  %v519_v3 = vld [vmem:[#allocation7 + $0x18] sm:$0xff]   ;;  %v81_v4 = vld [vmem:[#allocation2] sm:$0xf]  ;;  %vm105_vm1 = vcmask 261120   ;;  %v520_v5 = vld [vmem:[#allocation7 + $0x10] sm:$0xff]   ;;  %vm189_vm2 = vcmask 523264  }
  0x35   :  { %472 = vmatprep.subr.bf16.mxu1 %v645_v0  ;;  %480 = vmatprep.mubr.msk.bf16.mxu1 %vm646_vm0, %v645_v0  ;;  %v521_v6 = vld [vmem:[#allocation7 + $0x8] sm:$0xff]   ;;  %v522_v7 = vld [vmem:[#allocation7] sm:$0xff]   ;;  %v523_v8 = vld [vmem:[#allocation7 + $0x38] sm:$0xff]   ;;  %s647_s26 = smov [#allocation10]  }
  0x36   :  { %465 = vmatpush3.bf16.msra.mxu0 %v517_v1  ;;  %473 = vmatpush3.bf16.msra.mxu1 %v519_v3  ;;  %v524_v9 = vld [vmem:[#allocation7 + $0x30] sm:$0xff]   ;;  %v423_v10 = vld [vmem:[%s751_s2] ss:$0 sm:$0xff]  ;;  %v526_v18 = vld [vmem:[#allocation7 + $0x20] sm:$0xff]   ;;  %s412_s27 = sshll.u32 %s647_s26, 4  ;;  %s413_s27 = int_to_ptr.vmem [resolvable:$true] %s412_s27 }
  0x37   :  { %466 = vmatprep.subr.bf16.mxu0 %v645_v0  ;;  %474 = vmatprep.subr.bf16.mxu1 %v645_v0  ;;  %v525_v17 = vld [vmem:[#allocation7 + $0x28] sm:$0xff]   ;;  %v527_v19 = vld [vmem:[#allocation8 + $0x18] sm:$0xff]   ;;  %v528_v20 = vld [vmem:[#allocation8 + $0x10] sm:$0xff]   ;;  %p616_p7 = scmp.lt.s32.totalorder %s413_s27, %s413_s27 }
  0x38   :  { %v427_v21 = vld [vmem:[%s753_s4] ss:$0 sm:$0xff]  ;;  %v530_v31 = vld [vmem:[#allocation8] sm:$0xff]   ;;  %v434_v32 = vld [vmem:[%s753_s4 + $0x1] ss:$0 sm:$0xff]  ;;  %s611_s4 = scalar_lea.vmem %s413_s27, 128 }
  0x39   :  { %v529_v30 = vld [vmem:[#allocation8 + $0x8] sm:$0xff]   ;;  %p612_p6 = scmp.ne.s32.totalorder %s413_s27, %s611_s4  ;;  %p617_p8 = scmp.lt.s32.totalorder %s611_s4, %s611_s4 }
  0x3a   :  { %467 = vmatpush3.bf16.msra.mxu0 %v518_v2  ;;  %475 = vmatpush3.bf16.msra.mxu1 %v520_v5  ;;  %v440_v41 = vld [vmem:[%s755_s6] ss:$0 sm:$0xff] }
  0x3b   :  { %484 = vmatprep.subr.bf16.mxu0 %v645_v0  ;;  %476 = vmatprep.subr.bf16.mxu1 %v645_v0  ;;  %p618_p9 = por %p617_p8, %p616_p7 }
  0x3d   :  { %469 = vmatmul.mubr.msk.bf16.vlgmr.msra.gmra.mxu0 %vm105_vm1, %v81_v4  ;;  %p619_p10 = pnand %p618_p9, %p612_p6 }
  0x3e   :  { %492 = vmatprep.mubr.msk.bf16.mxu0 %vm646_vm0, %v645_v0  ;;  %477 = vmatpush3.bf16.msra.mxu1 %v521_v6 }
  0x3f   :  { %478 = vmatprep.subr.bf16.mxu1 %v645_v0  ;;  %485 = vmatpush3.bf16.msra.mxu0 %v523_v8 }
  0x40   :  { %486 = vmatprep.subr.bf16.mxu0 %v645_v0 }
  0x42   :  { %479 = vmatpush3.bf16.msra.mxu1 %v522_v7 }
  0x43   :  { %496 = vmatprep.subr.bf16.mxu1 %v645_v0  ;;  %487 = vmatpush3.bf16.msra.mxu0 %v524_v9 }
  0x44   :  { %488 = vmatprep.subr.bf16.mxu0 %v645_v0 }
  0x47   :  { %489 = vmatpush3.bf16.msra.mxu0 %v525_v17 }
  0x48   :  { %490 = vmatprep.subr.bf16.mxu0 %v645_v0 }
  0x4b   :  { %491 = vmatpush3.bf16.msra.mxu0 %v526_v18 }
  0xfd   :  { %v143_v11 = vpop.f32.mrf.mxu0 }
  0xfe   :  { %v144_v12 = vadd.f32 %v423_v10, %v143_v11 }
  0xff   :  { %v470_v13 = vpop.f32.mrf.mxu0 }
 0x100   :  { %v149_v14 = vpack.c.bf16 %v144_v12, %v144_v12 }
 0x101   :  { %v146_v15 = vpop.f32.mrf.mxu0 }
 0x102   :  { %481 = vmatmul.mubr.msk.bf16.vlgmr.msra.gmra.mxu1 %vm189_vm2, %v149_v14 }
 0x103   :  { %v471_v16 = vpop.f32.mrf.mxu0  ;;  %504 = vmatprep.mubr.msk.bf16.mxu1 %vm646_vm0, %v645_v0  ;;  %497 = vmatpush3.bf16.msra.mxu1 %v527_v19 }
 0x104   :  { %498 = vmatprep.subr.bf16.mxu1 %v645_v0 }
 0x107   :  { %499 = vmatpush3.bf16.msra.mxu1 %v528_v20 }
 0x108   :  { %500 = vmatprep.subr.bf16.mxu1 %v645_v0 }
 0x10b   :  { %501 = vmatpush3.bf16.msra.mxu1 %v529_v30 }
 0x10c   :  { %502 = vmatprep.subr.bf16.mxu1 %v645_v0 }
 0x10f   :  { %503 = vmatpush3.bf16.msra.mxu1 %v530_v31 }
 0x1c2   :  { %v227_v22 = vpop.f32.mrf.mxu1 }
 0x1c3   :  { %v228_v23 = vadd.f32 %v427_v21, %v227_v22 }
 0x1c4   :  { %v482_v24 = vpop.f32.mrf.mxu1 }
 0x1c5   :  { %v233_v25 = vadd.f32 %v228_v23, %v144_v12 }
 0x1c6   :  { %v230_v26 = vpop.f32.mrf.mxu1 }
 0x1c7   :  { %v234_v27 = vmax.f32 %v233_v25, 0.0 }
 0x1c8   :  { %v483_v28 = vpop.f32.mrf.mxu1 }
 0x1c9   :  { %v235_v29 = vpack.c.bf16 %v234_v27, %v234_v27 }
 0x1cb   :  { %493 = vmatmul.mubr.msk.bf16.vlgmr.msra.gmra.mxu0 %vm189_vm2, %v235_v29 }
 0x28b   :  { %v314_v33 = vpop.f32.mrf.mxu0 }
 0x28c   :  { %v315_v34 = vadd.f32 %v434_v32, %v314_v33 }
 0x28d   :  { %v494_v35 = vpop.f32.mrf.mxu0 }
 0x28e   :  { %v320_v36 = vadd.f32 %v315_v34, %v234_v27 }
 0x28f   :  { %v317_v37 = vpop.f32.mrf.mxu0 }
 0x290   :  { %v321_v38 = vmax.f32 %v320_v36, 0.0 }
 0x291   :  { %v495_v39 = vpop.f32.mrf.mxu0 }
 0x292   :  { %v322_v40 = vpack.c.bf16 %v321_v38, %v321_v38 }
 0x294   :  { %505 = vmatmul.mubr.msk.bf16.vlgmr.msra.gmra.mxu1 %vm189_vm2, %v322_v40 }
 0x354   :  { %v399_v42 = vpop.f32.mrf.mxu1 }
 0x355   :  { %v400_v43 = vadd.f32 %v440_v41, %v399_v42 }
 0x356   :  { %v506_v44 = vpop.f32.mrf.mxu1 }
 0x357   :  { %405 = vst [vmem:[#allocation10] sm:$0xff] %v400_v43 }
 0x358   :  { %v402_v45 = vpop.f32.mrf.mxu1 }
 0x359   :  { %622 = shalt.err (!%p619_p10)
}
 0x35a   :  { %415 = dma.vmem_to_hbm [thread:$0]  %s413_s27, 128, %s756_s7, [#allocation4]   ;;  %v507_v46 = vpop.f32.mrf.mxu1 }
 0x35b   :  { %637 = dma.done.wait [#allocation4], 128  }
 0x35c   :  { %638 = vsyncadd [#allocation4], 4294967168 }
 0x35d   :  { %419 = vsyncpa [#allocation3], 1 }
 0x35e   :  { %420 = vsyncpa [#allocation6], 1 }
 0x35f   :  { %421 = vsyncpa [#allocation9], 1 }
 0x360   :  { %422 = vsyncpa [#allocation4], 1 }

</bundles_post_ra>
